<compile_context>
chip_gen: v5e
topology: v5e:2x2
jax: 0.10.0
libtpu: 0.0.40
codegen_flags: <defaults>
</compile_context>

<pallas_src>
import jax
import jax.numpy as jnp
from jax import lax
from jax.experimental import pallas as pl
from jax.experimental.pallas import tpu as pltpu


# ----------------------------------------------------------------------------
# Pallas kernel: one grid step == one sequence's full recurrence.
# Working set is a few KiB, far under VMEM on every TPU generation.
# ----------------------------------------------------------------------------
def gru_kernel(xzr_ref,    # VMEM (S, 2H) f32  gathered [W_xz.T|W_xr.T] rows + [B_z|B_r]
               xk_ref,     # VMEM (S, H)  f32  gathered W_xk.T rows + B_k
               whzr_ref,   # VMEM (H, 2H) f32  [W_hz.T | W_hr.T]
               whk_ref,    # VMEM (H, H)  f32  W_hk.T
               why_ref,    # VMEM (H, V)  f32  W_hy.T
               h0_ref,     # VMEM (1, H)  f32  initial_h
               out_ref):   # VMEM (S, V)  f32  logits for this sequence
    S = out_ref.shape[0]
    H = whk_ref.shape[0]

    # Small, lane-dense recurrent weights: hold in vregs across the loop.
    # TODO(synk): cast WhzrT/WhkT (and the x rows) to bf16 at the dot inputs if
    # H grows; at H=32 the win is negligible and f32 keeps tolerances tight.
    WhzrT = whzr_ref[...]     # (H, 2H)
    WhkT = whk_ref[...]       # (H, H)

    h = h0_ref[...]           # (1, H)
    hs = []                   # pre-update hidden states, kept in vregs

    # Sequential recurrence, static trip count (fully unrolled; at S=8 this is
    # desirable for LLO scheduling).
    # TODO(synk): switch to lax.fori_loop(..., unroll=4) if S grows beyond ~32.
    for t in range(S):
        hs.append(h)

        # Fused z/r gate: single matmul + single sigmoid over (1, 2H).
        zr = jax.nn.sigmoid(
            xzr_ref[t:t + 1, :]
            + jnp.dot(h, WhzrT, preferred_element_type=jnp.float32))
        z = zr[:, 0:H]
        r = zr[:, H:2 * H]

        # Candidate gate (depends on r*h, kept separate).
        k = jnp.tanh(
            xk_ref[t:t + 1, :]
            + jnp.dot(r * h, WhkT, preferred_element_type=jnp.float32))

        h = (1.0 - z) * h + z * k

    # outputs[t] = W_hy @ h_t: one dense (S,H)@(H,V) matmul + one lane-dense
    # (S, V) store (V = 128 -> unmasked vst).
    hs_mat = jnp.concatenate(hs, axis=0)          # (S, H), lives in vregs
    out_ref[...] = jnp.dot(hs_mat, why_ref[...],
                           preferred_element_type=jnp.float32)


def gru_forward(tokens, params):
    """tokens: (B, S) int32 token ids -> (B, S, V) float32 logits."""
    B, S = tokens.shape
    H = params["W_hz"].shape[0]
    V = params["W_hy"].shape[0]

    tokens = tokens.astype(jnp.int32)

    # ---- wrapper-side layout plumbing (cheap, off the serial path) ----------
    # One-hot matmul == row gather: pre-gather the x contributions per token
    # and fold the biases in.  Two lane-aligned arrays (2H and H wide).
    wxzr = jnp.concatenate([params["W_xz"].T, params["W_xr"].T], axis=1)   # (V, 2H)
    wxk = params["W_xk"].T                                                 # (V, H)
    bzr = jnp.concatenate([params["B_z"], params["B_r"]])                  # (2H,)
    bk = params["B_k"]                                                     # (H,)
    xzr = wxzr[tokens] + bzr[None, None, :]                                # (B, S, 2H)
    xk = wxk[tokens] + bk[None, None, :]                                   # (B, S, H)

    # Dense recurrent / output weights in lane-dense layouts.
    whzr = jnp.concatenate([params["W_hz"].T, params["W_hr"].T], axis=1)   # (H, 2H)
    whk = params["W_hk"].T                                                 # (H, H)
    why = params["W_hy"].T                                                 # (H, V)
    h0 = params["initial_h"].reshape(1, H)                                 # (1, H)

    grid_spec = pltpu.PrefetchScalarGridSpec(
        num_scalar_prefetch=0,
        grid=(B,),
        in_specs=[
            # Per-sequence inputs: leading batch dim squeezed out of the kernel.
            pl.BlockSpec((None, S, 2 * H), lambda b: (b, 0, 0)),
            pl.BlockSpec((None, S, H), lambda b: (b, 0, 0)),
            # Shared weights: same block for every grid step.
            pl.BlockSpec((H, 2 * H), lambda b: (0, 0)),
            pl.BlockSpec((H, H), lambda b: (0, 0)),
            pl.BlockSpec((H, V), lambda b: (0, 0)),
            pl.BlockSpec((1, H), lambda b: (0, 0)),
        ],
        out_specs=pl.BlockSpec((None, S, V), lambda b: (b, 0, 0)),
    )

    return pl.pallas_call(
        gru_kernel,
        out_shape=jax.ShapeDtypeStruct((B, S, V), jnp.float32),
        grid_spec=grid_spec,
        compiler_params=pltpu.CompilerParams(
            dimension_semantics=("parallel",)),   # sequences are independent
    )(xzr, xk, whzr, whk, why, h0)


# ----------------------------------------------------------------------------
# Pure-JAX reference (mirrors the PyTorch forward) for a correctness check.
# ----------------------------------------------------------------------------
def gru_forward_ref(tokens, params):
    V = params["W_xz"].shape[1]

    def single(seq):
        x_seq = jax.nn.one_hot(seq, V, dtype=jnp.float32)

        def step(h, xt):
            z = jax.nn.sigmoid(params["W_xz"] @ xt + params["W_hz"] @ h + params["B_z"])
            r = jax.nn.sigmoid(params["W_xr"] @ xt + params["W_hr"] @ h + params["B_r"])
            k = jnp.tanh(params["W_xk"] @ xt + params["W_hk"] @ (r * h) + params["B_k"])
            h_new = (1.0 - z) * h + z * k
            # output emitted at step t is W_hy @ h_t (pre-update hidden state)
            return h_new, params["W_hy"] @ h

        _, outs = lax.scan(step, params["initial_h"], x_seq)
        return outs

    return jax.vmap(single)(tokens)


# ----------------------------------------------------------------------------
# Deterministic parameter init (xavier-normal for weights, zeros otherwise).
# ----------------------------------------------------------------------------
def init_params(key, hidden_dim, num_tokens):
    def xavier(k, shape):
        fan_out, fan_in = shape
        std = (2.0 / (fan_in + fan_out)) ** 0.5
        return std * jax.random.normal(k, shape, dtype=jnp.float32)

    keys = jax.random.split(key, 7)
    H, V = hidden_dim, num_tokens
    return {
        "initial_h": jnp.zeros((H,), jnp.float32),
        "W_xz": xavier(keys[0], (H, V)),
        "W_xr": xavier(keys[1], (H, V)),
        "W_xk": xavier(keys[2], (H, V)),
        "W_hz": xavier(keys[3], (H, H)),
        "W_hr": xavier(keys[4], (H, H)),
        "W_hk": xavier(keys[5], (H, H)),
        "W_hy": xavier(keys[6], (V, H)),
        "B_k": jnp.zeros((H,), jnp.float32),
        "B_z": jnp.zeros((H,), jnp.float32),
        "B_r": jnp.zeros((H,), jnp.float32),
    }


if __name__ == "__main__":
    BATCH = 2      # independent sequences (parallel grid axis / 2nd TC on v7x)
    SEQ = 8        # sequence length
    HIDDEN = 32    # hidden_dim
    VOCAB = 128    # tokenizer.num_unique_tokens

    key = jax.random.PRNGKey(0)
    k_params, k_tokens = jax.random.split(key)

    params = init_params(k_params, HIDDEN, VOCAB)

    # Token ids (GRUModel.package_batch would turn these into one-hot rows;
    # the wrapper gathers weight rows directly instead).
    tokens = jax.random.randint(k_tokens, (BATCH, SEQ), 0, VOCAB, dtype=jnp.int32)

    out = gru_forward(tokens, params)
    out = jax.block_until_ready(out)

    ref = gru_forward_ref(tokens, params)
    assert out.shape == (BATCH, SEQ, VOCAB)
    assert jnp.allclose(out, ref, atol=1e-3, rtol=1e-3), "mismatch vs reference"

    print("KERNEL_OK")
</pallas_src>

<mosaic_0001>
module attributes {stable_mosaic.version = 11 : i64} {
  func.func @gru_kernel(%arg0: i32, %arg1: memref<1x8x64xf32, #tpu.memory_space<vmem>>, %arg2: memref<1x8x32xf32, #tpu.memory_space<vmem>>, %arg3: memref<32x64xf32, #tpu.memory_space<vmem>>, %arg4: memref<32x32xf32, #tpu.memory_space<vmem>>, %arg5: memref<32x128xf32, #tpu.memory_space<vmem>>, %arg6: memref<1x32xf32, #tpu.memory_space<vmem>>, %arg7: memref<1x8x128xf32, #tpu.memory_space<vmem>>) attributes {dimension_semantics = [#tpu.dimension_semantics<parallel>], iteration_bounds = array<i64: 2>, scalar_prefetch = 0 : i64, scratch_operands = 0 : i64, tpu.core_type = #tpu.core_type<tc>, window_params = [{transform_indices = @transform_0, window_bounds = array<i64: 1, 8, 64>}, {transform_indices = @transform_1, window_bounds = array<i64: 1, 8, 32>}, {pipeline_mode = #tpu.pipeline_mode<synchronous>, transform_indices = @transform_2, window_bounds = array<i64: 32, 64>}, {pipeline_mode = #tpu.pipeline_mode<synchronous>, transform_indices = @transform_3, window_bounds = array<i64: 32, 32>}, {pipeline_mode = #tpu.pipeline_mode<synchronous>, transform_indices = @transform_4, window_bounds = array<i64: 32, 128>}, {pipeline_mode = #tpu.pipeline_mode<synchronous>, transform_indices = @transform_5, window_bounds = array<i64: 1, 32>}, {transform_indices = @transform_6, window_bounds = array<i64: 1, 8, 128>}]} {
    %c0 = arith.constant 0 : index
    %c0_0 = arith.constant 0 : index
    %0 = vector.load %arg3[%c0, %c0_0] : memref<32x64xf32, #tpu.memory_space<vmem>>, vector<32x64xf32>
    %c0_1 = arith.constant 0 : index
    %c0_2 = arith.constant 0 : index
    %1 = vector.load %arg4[%c0_1, %c0_2] : memref<32x32xf32, #tpu.memory_space<vmem>>, vector<32x32xf32>
    %c0_3 = arith.constant 0 : index
    %c0_4 = arith.constant 0 : index
    %2 = vector.load %arg6[%c0_3, %c0_4] : memref<1x32xf32, #tpu.memory_space<vmem>>, vector<1x32xf32>
    %c0_5 = arith.constant 0 : index
    %c0_6 = arith.constant 0 : index
    %c0_7 = arith.constant 0 : index
    %3 = vector.load %arg1[%c0_5, %c0_6, %c0_7] : memref<1x8x64xf32, #tpu.memory_space<vmem>>, vector<1x1x64xf32>
    %4 = vector.shape_cast %3 : vector<1x1x64xf32> to vector<1x64xf32>
    %cst = arith.constant dense<0.000000e+00> : vector<1x64xf32>
    %5 = tpu.matmul %2, %0, %cst {dimension_numbers = #tpu.dot_dimension_numbers<[1], [0], [0], [1], [0, 0, 1, 1], [], []>} : vector<1x32xf32>, vector<32x64xf32>, vector<1x64xf32> -> vector<1x64xf32>
    %6 = arith.addf %4, %5 : vector<1x64xf32>
    %7 = arith.negf %6 : vector<1x64xf32>
    %8 = math.exp %7 : vector<1x64xf32>
    %cst_8 = arith.constant 1.000000e+00 : f32
    %9 = vector.broadcast %cst_8 : f32 to vector<1x64xf32>
    %10 = arith.addf %9, %8 : vector<1x64xf32>
    %11 = arith.divf %9, %10 : vector<1x64xf32>
    %12 = vector.extract_strided_slice %11 {offsets = [0, 0], sizes = [1, 32], strides = [1, 1]} : vector<1x64xf32> to vector<1x32xf32>
    %13 = vector.extract_strided_slice %11 {offsets = [0, 32], sizes = [1, 32], strides = [1, 1]} : vector<1x64xf32> to vector<1x32xf32>
    %c0_9 = arith.constant 0 : index
    %c0_10 = arith.constant 0 : index
    %c0_11 = arith.constant 0 : index
    %14 = vector.load %arg2[%c0_9, %c0_10, %c0_11] : memref<1x8x32xf32, #tpu.memory_space<vmem>>, vector<1x1x32xf32>
    %15 = vector.shape_cast %14 : vector<1x1x32xf32> to vector<1x32xf32>
    %16 = arith.mulf %13, %2 : vector<1x32xf32>
    %cst_12 = arith.constant dense<0.000000e+00> : vector<1x32xf32>
    %17 = tpu.matmul %16, %1, %cst_12 {dimension_numbers = #tpu.dot_dimension_numbers<[1], [0], [0], [1], [0, 0, 1, 1], [], []>} : vector<1x32xf32>, vector<32x32xf32>, vector<1x32xf32> -> vector<1x32xf32>
    %18 = arith.addf %15, %17 : vector<1x32xf32>
    %19 = math.tanh %18 : vector<1x32xf32>
    %cst_13 = arith.constant 1.000000e+00 : f32
    %20 = vector.broadcast %cst_13 : f32 to vector<1x32xf32>
    %21 = arith.subf %20, %12 : vector<1x32xf32>
    %22 = arith.mulf %21, %2 : vector<1x32xf32>
    %23 = arith.mulf %12, %19 : vector<1x32xf32>
    %24 = arith.addf %22, %23 : vector<1x32xf32>
    %c0_14 = arith.constant 0 : index
    %c1 = arith.constant 1 : index
    %c0_15 = arith.constant 0 : index
    %25 = vector.load %arg1[%c0_14, %c1, %c0_15] : memref<1x8x64xf32, #tpu.memory_space<vmem>>, vector<1x1x64xf32>
    %26 = vector.shape_cast %25 : vector<1x1x64xf32> to vector<1x64xf32>
    %cst_16 = arith.constant dense<0.000000e+00> : vector<1x64xf32>
    %27 = tpu.matmul %24, %0, %cst_16 {dimension_numbers = #tpu.dot_dimension_numbers<[1], [0], [0], [1], [0, 0, 1, 1], [], []>} : vector<1x32xf32>, vector<32x64xf32>, vector<1x64xf32> -> vector<1x64xf32>
    %28 = arith.addf %26, %27 : vector<1x64xf32>
    %29 = arith.negf %28 : vector<1x64xf32>
    %30 = math.exp %29 : vector<1x64xf32>
    %cst_17 = arith.constant 1.000000e+00 : f32
    %31 = vector.broadcast %cst_17 : f32 to vector<1x64xf32>
    %32 = arith.addf %31, %30 : vector<1x64xf32>
    %33 = arith.divf %31, %32 : vector<1x64xf32>
    %34 = vector.extract_strided_slice %33 {offsets = [0, 0], sizes = [1, 32], strides = [1, 1]} : vector<1x64xf32> to vector<1x32xf32>
    %35 = vector.extract_strided_slice %33 {offsets = [0, 32], sizes = [1, 32], strides = [1, 1]} : vector<1x64xf32> to vector<1x32xf32>
    %c0_18 = arith.constant 0 : index
    %c1_19 = arith.constant 1 : index
    %c0_20 = arith.constant 0 : index
    %36 = vector.load %arg2[%c0_18, %c1_19, %c0_20] : memref<1x8x32xf32, #tpu.memory_space<vmem>>, vector<1x1x32xf32>
    %37 = vector.shape_cast %36 : vector<1x1x32xf32> to vector<1x32xf32>
    %38 = arith.mulf %35, %24 : vector<1x32xf32>
    %cst_21 = arith.constant dense<0.000000e+00> : vector<1x32xf32>
    %39 = tpu.matmul %38, %1, %cst_21 {dimension_numbers = #tpu.dot_dimension_numbers<[1], [0], [0], [1], [0, 0, 1, 1], [], []>} : vector<1x32xf32>, vector<32x32xf32>, vector<1x32xf32> -> vector<1x32xf32>
    %40 = arith.addf %37, %39 : vector<1x32xf32>
    %41 = math.tanh %40 : vector<1x32xf32>
    %cst_22 = arith.constant 1.000000e+00 : f32
    %42 = vector.broadcast %cst_22 : f32 to vector<1x32xf32>
    %43 = arith.subf %42, %34 : vector<1x32xf32>
    %44 = arith.mulf %43, %24 : vector<1x32xf32>
    %45 = arith.mulf %34, %41 : vector<1x32xf32>
    %46 = arith.addf %44, %45 : vector<1x32xf32>
    %c0_23 = arith.constant 0 : index
    %c2 = arith.constant 2 : index
    %c0_24 = arith.constant 0 : index
    %47 = vector.load %arg1[%c0_23, %c2, %c0_24] : memref<1x8x64xf32, #tpu.memory_space<vmem>>, vector<1x1x64xf32>
    %48 = vector.shape_cast %47 : vector<1x1x64xf32> to vector<1x64xf32>
    %cst_25 = arith.constant dense<0.000000e+00> : vector<1x64xf32>
    %49 = tpu.matmul %46, %0, %cst_25 {dimension_numbers = #tpu.dot_dimension_numbers<[1], [0], [0], [1], [0, 0, 1, 1], [], []>} : vector<1x32xf32>, vector<32x64xf32>, vector<1x64xf32> -> vector<1x64xf32>
    %50 = arith.addf %48, %49 : vector<1x64xf32>
    %51 = arith.negf %50 : vector<1x64xf32>
    %52 = math.exp %51 : vector<1x64xf32>
    %cst_26 = arith.constant 1.000000e+00 : f32
    %53 = vector.broadcast %cst_26 : f32 to vector<1x64xf32>
    %54 = arith.addf %53, %52 : vector<1x64xf32>
    %55 = arith.divf %53, %54 : vector<1x64xf32>
    %56 = vector.extract_strided_slice %55 {offsets = [0, 0], sizes = [1, 32], strides = [1, 1]} : vector<1x64xf32> to vector<1x32xf32>
    %57 = vector.extract_strided_slice %55 {offsets = [0, 32], sizes = [1, 32], strides = [1, 1]} : vector<1x64xf32> to vector<1x32xf32>
    %c0_27 = arith.constant 0 : index
    %c2_28 = arith.constant 2 : index
    %c0_29 = arith.constant 0 : index
    %58 = vector.load %arg2[%c0_27, %c2_28, %c0_29] : memref<1x8x32xf32, #tpu.memory_space<vmem>>, vector<1x1x32xf32>
    %59 = vector.shape_cast %58 : vector<1x1x32xf32> to vector<1x32xf32>
    %60 = arith.mulf %57, %46 : vector<1x32xf32>
    %cst_30 = arith.constant dense<0.000000e+00> : vector<1x32xf32>
    %61 = tpu.matmul %60, %1, %cst_30 {dimension_numbers = #tpu.dot_dimension_numbers<[1], [0], [0], [1], [0, 0, 1, 1], [], []>} : vector<1x32xf32>, vector<32x32xf32>, vector<1x32xf32> -> vector<1x32xf32>
    %62 = arith.addf %59, %61 : vector<1x32xf32>
    %63 = math.tanh %62 : vector<1x32xf32>
    %cst_31 = arith.constant 1.000000e+00 : f32
    %64 = vector.broadcast %cst_31 : f32 to vector<1x32xf32>
    %65 = arith.subf %64, %56 : vector<1x32xf32>
    %66 = arith.mulf %65, %46 : vector<1x32xf32>
    %67 = arith.mulf %56, %63 : vector<1x32xf32>
    %68 = arith.addf %66, %67 : vector<1x32xf32>
    %c0_32 = arith.constant 0 : index
    %c3 = arith.constant 3 : index
    %c0_33 = arith.constant 0 : index
    %69 = vector.load %arg1[%c0_32, %c3, %c0_33] : memref<1x8x64xf32, #tpu.memory_space<vmem>>, vector<1x1x64xf32>
    %70 = vector.shape_cast %69 : vector<1x1x64xf32> to vector<1x64xf32>
    %cst_34 = arith.constant dense<0.000000e+00> : vector<1x64xf32>
    %71 = tpu.matmul %68, %0, %cst_34 {dimension_numbers = #tpu.dot_dimension_numbers<[1], [0], [0], [1], [0, 0, 1, 1], [], []>} : vector<1x32xf32>, vector<32x64xf32>, vector<1x64xf32> -> vector<1x64xf32>
    %72 = arith.addf %70, %71 : vector<1x64xf32>
    %73 = arith.negf %72 : vector<1x64xf32>
    %74 = math.exp %73 : vector<1x64xf32>
    %cst_35 = arith.constant 1.000000e+00 : f32
    %75 = vector.broadcast %cst_35 : f32 to vector<1x64xf32>
    %76 = arith.addf %75, %74 : vector<1x64xf32>
    %77 = arith.divf %75, %76 : vector<1x64xf32>
    %78 = vector.extract_strided_slice %77 {offsets = [0, 0], sizes = [1, 32], strides = [1, 1]} : vector<1x64xf32> to vector<1x32xf32>
    %79 = vector.extract_strided_slice %77 {offsets = [0, 32], sizes = [1, 32], strides = [1, 1]} : vector<1x64xf32> to vector<1x32xf32>
    %c0_36 = arith.constant 0 : index
    %c3_37 = arith.constant 3 : index
    %c0_38 = arith.constant 0 : index
    %80 = vector.load %arg2[%c0_36, %c3_37, %c0_38] : memref<1x8x32xf32, #tpu.memory_space<vmem>>, vector<1x1x32xf32>
    %81 = vector.shape_cast %80 : vector<1x1x32xf32> to vector<1x32xf32>
    %82 = arith.mulf %79, %68 : vector<1x32xf32>
    %cst_39 = arith.constant dense<0.000000e+00> : vector<1x32xf32>
    %83 = tpu.matmul %82, %1, %cst_39 {dimension_numbers = #tpu.dot_dimension_numbers<[1], [0], [0], [1], [0, 0, 1, 1], [], []>} : vector<1x32xf32>, vector<32x32xf32>, vector<1x32xf32> -> vector<1x32xf32>
    %84 = arith.addf %81, %83 : vector<1x32xf32>
    %85 = math.tanh %84 : vector<1x32xf32>
    %cst_40 = arith.constant 1.000000e+00 : f32
    %86 = vector.broadcast %cst_40 : f32 to vector<1x32xf32>
    %87 = arith.subf %86, %78 : vector<1x32xf32>
    %88 = arith.mulf %87, %68 : vector<1x32xf32>
    %89 = arith.mulf %78, %85 : vector<1x32xf32>
    %90 = arith.addf %88, %89 : vector<1x32xf32>
    %c0_41 = arith.constant 0 : index
    %c4 = arith.constant 4 : index
    %c0_42 = arith.constant 0 : index
    %91 = vector.load %arg1[%c0_41, %c4, %c0_42] : memref<1x8x64xf32, #tpu.memory_space<vmem>>, vector<1x1x64xf32>
    %92 = vector.shape_cast %91 : vector<1x1x64xf32> to vector<1x64xf32>
    %cst_43 = arith.constant dense<0.000000e+00> : vector<1x64xf32>
    %93 = tpu.matmul %90, %0, %cst_43 {dimension_numbers = #tpu.dot_dimension_numbers<[1], [0], [0], [1], [0, 0, 1, 1], [], []>} : vector<1x32xf32>, vector<32x64xf32>, vector<1x64xf32> -> vector<1x64xf32>
    %94 = arith.addf %92, %93 : vector<1x64xf32>
    %95 = arith.negf %94 : vector<1x64xf32>
    %96 = math.exp %95 : vector<1x64xf32>
    %cst_44 = arith.constant 1.000000e+00 : f32
    %97 = vector.broadcast %cst_44 : f32 to vector<1x64xf32>
    %98 = arith.addf %97, %96 : vector<1x64xf32>
    %99 = arith.divf %97, %98 : vector<1x64xf32>
    %100 = vector.extract_strided_slice %99 {offsets = [0, 0], sizes = [1, 32], strides = [1, 1]} : vector<1x64xf32> to vector<1x32xf32>
    %101 = vector.extract_strided_slice %99 {offsets = [0, 32], sizes = [1, 32], strides = [1, 1]} : vector<1x64xf32> to vector<1x32xf32>
    %c0_45 = arith.constant 0 : index
    %c4_46 = arith.constant 4 : index
    %c0_47 = arith.constant 0 : index
    %102 = vector.load %arg2[%c0_45, %c4_46, %c0_47] : memref<1x8x32xf32, #tpu.memory_space<vmem>>, vector<1x1x32xf32>
    %103 = vector.shape_cast %102 : vector<1x1x32xf32> to vector<1x32xf32>
    %104 = arith.mulf %101, %90 : vector<1x32xf32>
    %cst_48 = arith.constant dense<0.000000e+00> : vector<1x32xf32>
    %105 = tpu.matmul %104, %1, %cst_48 {dimension_numbers = #tpu.dot_dimension_numbers<[1], [0], [0], [1], [0, 0, 1, 1], [], []>} : vector<1x32xf32>, vector<32x32xf32>, vector<1x32xf32> -> vector<1x32xf32>
    %106 = arith.addf %103, %105 : vector<1x32xf32>
    %107 = math.tanh %106 : vector<1x32xf32>
    %cst_49 = arith.constant 1.000000e+00 : f32
    %108 = vector.broadcast %cst_49 : f32 to vector<1x32xf32>
    %109 = arith.subf %108, %100 : vector<1x32xf32>
    %110 = arith.mulf %109, %90 : vector<1x32xf32>
    %111 = arith.mulf %100, %107 : vector<1x32xf32>
    %112 = arith.addf %110, %111 : vector<1x32xf32>
    %c0_50 = arith.constant 0 : index
    %c5 = arith.constant 5 : index
    %c0_51 = arith.constant 0 : index
    %113 = vector.load %arg1[%c0_50, %c5, %c0_51] : memref<1x8x64xf32, #tpu.memory_space<vmem>>, vector<1x1x64xf32>
    %114 = vector.shape_cast %113 : vector<1x1x64xf32> to vector<1x64xf32>
    %cst_52 = arith.constant dense<0.000000e+00> : vector<1x64xf32>
    %115 = tpu.matmul %112, %0, %cst_52 {dimension_numbers = #tpu.dot_dimension_numbers<[1], [0], [0], [1], [0, 0, 1, 1], [], []>} : vector<1x32xf32>, vector<32x64xf32>, vector<1x64xf32> -> vector<1x64xf32>
    %116 = arith.addf %114, %115 : vector<1x64xf32>
    %117 = arith.negf %116 : vector<1x64xf32>
    %118 = math.exp %117 : vector<1x64xf32>
    %cst_53 = arith.constant 1.000000e+00 : f32
    %119 = vector.broadcast %cst_53 : f32 to vector<1x64xf32>
    %120 = arith.addf %119, %118 : vector<1x64xf32>
    %121 = arith.divf %119, %120 : vector<1x64xf32>
    %122 = vector.extract_strided_slice %121 {offsets = [0, 0], sizes = [1, 32], strides = [1, 1]} : vector<1x64xf32> to vector<1x32xf32>
    %123 = vector.extract_strided_slice %121 {offsets = [0, 32], sizes = [1, 32], strides = [1, 1]} : vector<1x64xf32> to vector<1x32xf32>
    %c0_54 = arith.constant 0 : index
    %c5_55 = arith.constant 5 : index
    %c0_56 = arith.constant 0 : index
    %124 = vector.load %arg2[%c0_54, %c5_55, %c0_56] : memref<1x8x32xf32, #tpu.memory_space<vmem>>, vector<1x1x32xf32>
    %125 = vector.shape_cast %124 : vector<1x1x32xf32> to vector<1x32xf32>
    %126 = arith.mulf %123, %112 : vector<1x32xf32>
    %cst_57 = arith.constant dense<0.000000e+00> : vector<1x32xf32>
    %127 = tpu.matmul %126, %1, %cst_57 {dimension_numbers = #tpu.dot_dimension_numbers<[1], [0], [0], [1], [0, 0, 1, 1], [], []>} : vector<1x32xf32>, vector<32x32xf32>, vector<1x32xf32> -> vector<1x32xf32>
    %128 = arith.addf %125, %127 : vector<1x32xf32>
    %129 = math.tanh %128 : vector<1x32xf32>
    %cst_58 = arith.constant 1.000000e+00 : f32
    %130 = vector.broadcast %cst_58 : f32 to vector<1x32xf32>
    %131 = arith.subf %130, %122 : vector<1x32xf32>
    %132 = arith.mulf %131, %112 : vector<1x32xf32>
    %133 = arith.mulf %122, %129 : vector<1x32xf32>
    %134 = arith.addf %132, %133 : vector<1x32xf32>
    %c0_59 = arith.constant 0 : index
    %c6 = arith.constant 6 : index
    %c0_60 = arith.constant 0 : index
    %135 = vector.load %arg1[%c0_59, %c6, %c0_60] : memref<1x8x64xf32, #tpu.memory_space<vmem>>, vector<1x1x64xf32>
    %136 = vector.shape_cast %135 : vector<1x1x64xf32> to vector<1x64xf32>
    %cst_61 = arith.constant dense<0.000000e+00> : vector<1x64xf32>
    %137 = tpu.matmul %134, %0, %cst_61 {dimension_numbers = #tpu.dot_dimension_numbers<[1], [0], [0], [1], [0, 0, 1, 1], [], []>} : vector<1x32xf32>, vector<32x64xf32>, vector<1x64xf32> -> vector<1x64xf32>
    %138 = arith.addf %136, %137 : vector<1x64xf32>
    %139 = arith.negf %138 : vector<1x64xf32>
    %140 = math.exp %139 : vector<1x64xf32>
    %cst_62 = arith.constant 1.000000e+00 : f32
    %141 = vector.broadcast %cst_62 : f32 to vector<1x64xf32>
    %142 = arith.addf %141, %140 : vector<1x64xf32>
    %143 = arith.divf %141, %142 : vector<1x64xf32>
    %144 = vector.extract_strided_slice %143 {offsets = [0, 0], sizes = [1, 32], strides = [1, 1]} : vector<1x64xf32> to vector<1x32xf32>
    %145 = vector.extract_strided_slice %143 {offsets = [0, 32], sizes = [1, 32], strides = [1, 1]} : vector<1x64xf32> to vector<1x32xf32>
    %c0_63 = arith.constant 0 : index
    %c6_64 = arith.constant 6 : index
    %c0_65 = arith.constant 0 : index
    %146 = vector.load %arg2[%c0_63, %c6_64, %c0_65] : memref<1x8x32xf32, #tpu.memory_space<vmem>>, vector<1x1x32xf32>
    %147 = vector.shape_cast %146 : vector<1x1x32xf32> to vector<1x32xf32>
    %148 = arith.mulf %145, %134 : vector<1x32xf32>
    %cst_66 = arith.constant dense<0.000000e+00> : vector<1x32xf32>
    %149 = tpu.matmul %148, %1, %cst_66 {dimension_numbers = #tpu.dot_dimension_numbers<[1], [0], [0], [1], [0, 0, 1, 1], [], []>} : vector<1x32xf32>, vector<32x32xf32>, vector<1x32xf32> -> vector<1x32xf32>
    %150 = arith.addf %147, %149 : vector<1x32xf32>
    %151 = math.tanh %150 : vector<1x32xf32>
    %cst_67 = arith.constant 1.000000e+00 : f32
    %152 = vector.broadcast %cst_67 : f32 to vector<1x32xf32>
    %153 = arith.subf %152, %144 : vector<1x32xf32>
    %154 = arith.mulf %153, %134 : vector<1x32xf32>
    %155 = arith.mulf %144, %151 : vector<1x32xf32>
    %156 = arith.addf %154, %155 : vector<1x32xf32>
    %157 = tpu.concatenate %2, %24, %46, %68, %90, %112, %134, %156 in 0 : vector<1x32xf32>, vector<1x32xf32>, vector<1x32xf32>, vector<1x32xf32>, vector<1x32xf32>, vector<1x32xf32>, vector<1x32xf32>, vector<1x32xf32> -> vector<8x32xf32>
    %c0_68 = arith.constant 0 : index
    %c0_69 = arith.constant 0 : index
    %158 = vector.load %arg5[%c0_68, %c0_69] : memref<32x128xf32, #tpu.memory_space<vmem>>, vector<32x128xf32>
    %cst_70 = arith.constant dense<0.000000e+00> : vector<8x128xf32>
    %159 = tpu.matmul %157, %158, %cst_70 {dimension_numbers = #tpu.dot_dimension_numbers<[1], [0], [0], [1], [0, 0, 1, 1], [], []>} : vector<8x32xf32>, vector<32x128xf32>, vector<8x128xf32> -> vector<8x128xf32>
    %c0_71 = arith.constant 0 : index
    %c0_72 = arith.constant 0 : index
    %c0_73 = arith.constant 0 : index
    %160 = vector.load %arg7[%c0_71, %c0_72, %c0_73] : memref<1x8x128xf32, #tpu.memory_space<vmem>>, vector<1x8x128xf32>
    %161 = vector.shape_cast %160 : vector<1x8x128xf32> to vector<8x128xf32>
    %162 = vector.shape_cast %159 : vector<8x128xf32> to vector<1x8x128xf32>
    tpu.vector_store %arg7[%c0_71, %c0_72, %c0_73], %162 {strides = array<i32>} : memref<1x8x128xf32, #tpu.memory_space<vmem>>, vector<1x8x128xf32>,
    return
  }
  func.func @transform_0(%arg0: i32) -> (i32, i32, i32) {
    %c0_i32 = arith.constant 0 : i32
    %c0_i32_0 = arith.constant 0 : i32
    %c0_i32_1 = arith.constant 0 : i32
    return %arg0, %c0_i32, %c0_i32_0 : i32, i32, i32
  }
  func.func @transform_1(%arg0: i32) -> (i32, i32, i32) {
    %c0_i32 = arith.constant 0 : i32
    %c0_i32_0 = arith.constant 0 : i32
    %c0_i32_1 = arith.constant 0 : i32
    return %arg0, %c0_i32, %c0_i32_0 : i32, i32, i32
  }
  func.func @transform_2(%arg0: i32) -> (i32, i32) {
    %c0_i32 = arith.constant 0 : i32
    %c0_i32_0 = arith.constant 0 : i32
    %c0_i32_1 = arith.constant 0 : i32
    return %c0_i32, %c0_i32_0 : i32, i32
  }
  func.func @transform_3(%arg0: i32) -> (i32, i32) {
    %c0_i32 = arith.constant 0 : i32
    %c0_i32_0 = arith.constant 0 : i32
    %c0_i32_1 = arith.constant 0 : i32
    return %c0_i32, %c0_i32_0 : i32, i32
  }
  func.func @transform_4(%arg0: i32) -> (i32, i32) {
    %c0_i32 = arith.constant 0 : i32
    %c0_i32_0 = arith.constant 0 : i32
    %c0_i32_1 = arith.constant 0 : i32
    return %c0_i32, %c0_i32_0 : i32, i32
  }
  func.func @transform_5(%arg0: i32) -> (i32, i32) {
    %c0_i32 = arith.constant 0 : i32
    %c0_i32_0 = arith.constant 0 : i32
    %c0_i32_1 = arith.constant 0 : i32
    return %c0_i32, %c0_i32_0 : i32, i32
  }
  func.func @transform_6(%arg0: i32) -> (i32, i32, i32) {
    %c0_i32 = arith.constant 0 : i32
    %c0_i32_0 = arith.constant 0 : i32
    %c0_i32_1 = arith.constant 0 : i32
    return %arg0, %c0_i32, %c0_i32_0 : i32, i32, i32
  }
}

</mosaic_0001>

<bundles_post_ra>
// kernel: tpu_custom_call.1
= control target key start
LH: loop header
LB: loop body
LE: loop exit
PB: predicated region body
PF: predicated region fallthrough
CT: control target
= control target key end

     0   :  { %s1922_s0 = inlined_call_operand.hbm [shape: f32[2,8,64], index: 0, kind: input, shape index: {}]   ;;  %s1923_s1 = inlined_call_operand.hbm [shape: f32[2,8,32], index: 1, kind: input, shape index: {}]   ;;  %s1924_s2 = inlined_call_operand.hbm [shape: f32[32,64], index: 2, kind: input, shape index: {}]   ;;  %s1925_s3 = inlined_call_operand.hbm [shape: f32[32,32], index: 3, kind: input, shape index: {}]   ;;  %s1926_s4 = inlined_call_operand.hbm [shape: f32[32,128], index: 4, kind: input, shape index: {}]   ;;  %s1927_s5 = inlined_call_operand.vmem [shape: f32[1,32], index: 5, kind: input, shape index: {}]   ;;  %s1928_s6 = inlined_call_operand.hbm [shape: f32[2,8,128], index: 6, kind: output, shape index: {}]  }
   0x1   :  { %1930 = sst [smem:[#allocation19_spill]] %s1924_s2 }
   0x2   :  { %1931 = sst [smem:[#allocation20_spill]] %s1925_s3 }
   0x3   :  { %1932 = sst [smem:[#allocation21_spill]] %s1926_s4 }
   0x4   :  { %11 = vsyncpa [#allocation3], 0 }
   0x5   :  { %13 = vsyncpa [#allocation3 + $0x1], 0 }
   0x6   :  { %14 = vsyncpa [#allocation6], 0 }
   0x7   :  { %16 = vsyncpa [#allocation6 + $0x1], 0 }
   0x8   :  { %17 = vsyncpa [#allocation9], 0 }
   0x9   :  { %18 = vsyncpa [#allocation4], 0 }
   0xa   :  { %20 = vsyncpa [#allocation4 + $0x1], 0  ;;  %s1566_s21 = smov 0   ;;  %s1568_s22 = smov 0  }
   0xb   :  { %s1570_s23 = smov 0   ;;  %s1572_s24 = smov 0  }
   0xc LB: > { %1933 = sst [smem:[#allocation17_spill]] %s1518_s23  ;;  %s1590_s28 = sadd.s32 4294967295, %s1522_s24   ;;  %s1522_s24 = sphi %s1572_s24, %s1950_s24   ;;  %s1518_s23 = sphi %s1570_s23, %s1947_s23   ;;  %s1514_s22 = sphi %s1568_s22, %s1949_s22   ;;  %s1510_s21 = sphi %s1566_s21, %s1948_s21  }
   0xd   : > { %s1934_s2 = sld [smem:[#allocation19_spill]]  ;;  %p1123_p0 = scmp.ge.s32.totalorder %s1522_s24, 1 }
   0xe   : > { %p47_p1 = scmp.eq.s32.totalorder %s1590_s28, 0  ;;  %p193_p2 = scmp.lt.s32.totalorder %s1522_s24, 3 }
   0xf   : > { %s1524_s30 = smov [#allocation7]   ;;  %s1936_s3 = sld [smem:[#allocation20_spill]] }
  0x10   : > { %p1595_p3 = pnand %p1123_p0, %p193_p2  ;;  %s206_s7 = sshll.u32 %s1524_s30, 4  ;;  %s207_s7 = int_to_ptr.vmem [resolvable:$true] %s206_s7 }
  0x11   : > { %s1938_s4 = sld [smem:[#allocation21_spill]]  ;;  %s1525_s15 = smov [#allocation8]  }
  0x12   : > { %p1183_p4 = pneg %p1595_p3  ;;  %s220_s16 = sshll.u32 %s1525_s15, 4  ;;  %s221_s16 = int_to_ptr.vmem [resolvable:$true] %s220_s16 }
  0x13   : > { %s204_s27 = sshll.u32 %s1934_s2, 4  ;;  %s1526_s17 = smov 128   ;;  %s205_s27 = int_to_ptr.hbm [resolvable:$true] %s204_s27 }
  0x14   : > { %p1607_p6 = pnand %p1183_p4, %p47_p1  ;;  %s1527_s18 = smov 8  }
  0x15   : > { %s218_s10 = sshll.u32 %s1936_s3, 4  ;;  %s1528_s19 = smov [#allocation10]   ;;  %s219_s10 = int_to_ptr.hbm [resolvable:$true] %s218_s10 }
  0x16   : > { %1186 = dma.hbm_to_vmem [thread:$0]  (!%p1607_p6), %s205_s27, 512, %s207_s7, [#allocation6], %s1526_s17, %s1526_s17, %s1527_s18  }
  0x17   : > { %s232_s14 = sshll.u32 %s1938_s4, 4  ;;  %s234_s20 = sshll.u32 %s1528_s19, 4  ;;  %s233_s14 = int_to_ptr.hbm [resolvable:$true] %s232_s14  ;;  %s235_s20 = int_to_ptr.vmem [resolvable:$true] %s234_s20 }
  0x18   : > { %1189 = dma.hbm_to_vmem [thread:$0]  (!%p1607_p6), %s219_s10, 512, %s221_s16, [#allocation9], %s1526_s17, %s1526_s17, %s1527_s18  }
  0x19   : > { %1192 = dma.hbm_to_vmem [thread:$0]  (!%p1607_p6), %s233_s14, 512, %s235_s20, [#allocation9], %s1526_s17, %s1526_s17, %s1527_s18  }
  0x1a   : > { %s1122_s25 = sadd.s32 4294967294, %s1522_s24   ;;  %s1622_s26 = sadd.s32 1, %s1522_s24  }
  0x1b   : > { %s33_s30 = sadd.s32 1, %s1518_s23  ;;  %s30_s27 = ssub.s32 %s1522_s24, %s1622_s26 }
  0x1c   : > { %p40_p7 = scmp.ne.s32.totalorder %s1518_s23, %s1514_s22  ;;  %p31_p8 = scmp.eq.s32.totalorder %s30_s27, 0 }
  0x1d   : > { %p41_p9 = scmp.eq.s32.totalorder %s1522_s24, 0  ;;  %p46_p10 = scmp.ne.s32.totalorder %s1514_s22, %s1510_s21 }
  0x1e   : > { %p180_p11 = scmp.eq.s32.totalorder %s1590_s28, 1  ;;  %p186_p2 = scmp.eq.s32.totalorder %s1122_s25, 1 }
  0x1f   : > { %s1634_s7 = scalar_select %p31_p8, %s1518_s23, %s33_s30  }
  0x20   : > { %p1636_p12 = por %p41_p9, %p40_p7  ;;  %p1642_p13 = por %p47_p1, %p46_p10 }
  0x21   : > { %1939 = sst [smem:[#allocation18_spill]] %s1634_s7  ;;  %p1646_p0 = por %p180_p11, %p40_p7 }
  0x22   : > { %p1207_p4 = scmp.lt.s32.totalorder %s1522_s24, 2  ;;  %s251_s11 = sand.u32 1, %s1518_s23  }
  0x23   : > { %p1652_p6 = por %p186_p2, %p46_p10  ;;  %s1128_s13 = sshll.u32 %s251_s11, 3 }
  0x24   : > { %s1129_s14 = sshll.u32 %s1522_s24, 3  ;;  %s255_s19 = scalar_lea.vmem [#allocation2], %s1128_s13 }
  0x25   : > { %s259_s17 = scalar_lea.hbm %s1922_s0, %s1129_s14  ;;  %s263_s20 = sshll.u32 %s255_s19, 4  ;;  %s264_s20 = int_to_ptr.vmem [resolvable:$true] %s263_s20 }
  0x26   : > { %s261_s18 = sshll.u32 %s259_s17, 4  ;;  %p1662_p7 = pnand %p1207_p4, %p1636_p12  ;;  %s262_s18 = int_to_ptr.hbm [resolvable:$true] %s261_s18 }
  0x27   : > { %s278_s2 = scalar_lea.hbm %s1923_s1, %s1129_s14  ;;  %s270_s3 = sand.u32 1, %s1522_s24  }
  0x28   : > { %s252_s4 = scalar_lea.sflag [#allocation3], %s251_s11  ;;  %s1384_s15 = sshra.s32 %s262_s18, 4  ;;  %s1385_s15 = int_to_ptr.hbm [resolvable:$true] %s1384_s15 }
  0x29   : > { %s1386_s16 = scalar_lea.hbm %s1385_s15, 8  ;;  %p1388_p9 = pneg %p1662_p7 }
  0x2a   : > { %p1387_p8 = scmp.ne.s32.totalorder %s1385_s15, %s1386_s16  ;;  %s1391_s19 = scalar_lea.hbm %s1922_s0, 16 }
  0x2b   : > { %p1392_p12 = scmp.lt.s32.totalorder %s1385_s15, %s1922_s0  ;;  %p1393_p2 = scmp.lt.s32.totalorder %s1391_s19, %s1386_s16 }
  0x2c   : > { %p1389_p10 = pnand %p1388_p9, %p1387_p8 }
  0x2d   : > { %p1394_p4 = por %p1393_p2, %p1392_p12 }
  0x2e   : > { %p1390_p11 = pneg %p1389_p10 }
  0x30   : > { %p1395_p5 = pnand %p1394_p4, %p1390_p11 }
  0x32   : > { %1398 = shalt.err (!%p1395_p5)
}
  0x33   : > { %1196 = dma.hbm_to_vmem [thread:$0]  (!%p1662_p7), %s262_s18, 128, %s264_s20, %s252_s4  }
  0x34   : > { %s280_s11 = sshll.u32 %s278_s2, 4  ;;  %s274_s14 = scalar_lea.vmem [#allocation5], %s1128_s13  ;;  %s281_s11 = int_to_ptr.hbm [resolvable:$true] %s280_s11 }
  0x35   : > { %s282_s7 = sshll.u32 %s274_s14, 4  ;;  %s271_s23 = scalar_lea.sflag [#allocation6], %s270_s3  ;;  %s283_s7 = int_to_ptr.vmem [resolvable:$true] %s282_s7 }
  0x36   : > { %s1414_s8 = sshra.s32 %s281_s11, 4  ;;  %s1421_s19 = scalar_lea.hbm %s1923_s1, 16  ;;  %s1415_s8 = int_to_ptr.hbm [resolvable:$true] %s1414_s8 }
  0x37   : > { %s1416_s17 = scalar_lea.hbm %s1415_s8, 8  ;;  %p1422_p5 = scmp.lt.s32.totalorder %s1415_s8, %s1923_s1 }
  0x38   : > { %p1417_p8 = scmp.ne.s32.totalorder %s1415_s8, %s1416_s17  ;;  %p1423_p11 = scmp.lt.s32.totalorder %s1421_s19, %s1416_s17 }
  0x3a   : > { %p1419_p10 = pnand %p1417_p8, %p1388_p9  ;;  %p1424_p2 = por %p1423_p11, %p1422_p5 }
  0x3c   : > { %p1420_p12 = pneg %p1419_p10 }
  0x3e   : > { %p1425_p4 = pnand %p1424_p2, %p1420_p12 }
  0x40   : > { %1428 = shalt.err (!%p1425_p4)
}
  0x41   : > { %1199 = dma.hbm_to_vmem [thread:$0]  (!%p1662_p7), %s281_s11, 128, %s283_s7, %s271_s23  }
  0x42   : > { %291 = sbr.rel (%p1595_p3) target bundleno = 3097 (0xc19), region = 44  ;;  %s1697_s2 = sand.u32 (!%p1595_p3), 1, %s1514_s22  }
  0x43   : > { %s1700_s3 = sshll.u32 (!%p1595_p3), %s1697_s2, 3  ;;  %s294_s13 = scalar_lea.sflag (!%p1595_p3), [#allocation3], %s1697_s2 }
  0x44   : > { %s1704_s18 = scalar_lea.vmem (!%p1595_p3), [#allocation2], %s1700_s3 }
  0x47   : > { %1489 = dma.done.wait (%p1642_p13), %s294_s13, 128  }
  0x48   : > { %1491 = vsyncadd (%p1642_p13), %s294_s13, 4294967168  ;;  %s303_s23 = sand.u32 1, %s1590_s28   ;;  %s1712_s7 = scalar_lea.vmem [#allocation5], %s1700_s3 }
  0x49   : > { %s304_s29 = scalar_lea.sflag [#allocation6], %s303_s23 }
  0x4a   : > { %1493 = dma.done.wait (%p1642_p13), %s304_s29, 128  }
  0x4b   : > { %1495 = vsyncadd (%p1642_p13), %s304_s29, 4294967168 }
  0x4c   : > { %1497 = dma.done.wait (%p47_p1), [#allocation6], 512  }
  0x4d   : > { %1499 = vsyncadd (%p47_p1), [#allocation6], 4294966784 }
  0x4e   : > { %1501 = dma.done.wait (%p47_p1), [#allocation9], 1024  }
  0x4f   : > { %1503 = vsyncadd (%p47_p1), [#allocation9], 4294966272  ;;  %v1726_v0 = vld [vmem:[#allocation7 + $0x18] sm:$0xff]  ;;  %v1728_v1 = vld [vmem:[#allocation7 + $0x10] sm:$0xff]  ;;  %s1529_s25 = smov 32   ;;  %vm367_vm0 = vcmask 261120  }
  0x50   : > { %383 = vmatpush.msra.mxu0 %v1726_v0  ;;  %v1251_v2 = vld [vmem:[%s1927_s5] ss:$0 sm:$0xff]  ;;  %464 = vmatpush.msra.mxu2 %v1726_v0  ;;  %v1735_v3 = vld [vmem:[#allocation7 + $0x8] sm:$0xff]  ;;  %v1766_v9 = vld [vmem:[#allocation8 + $0x18] sm:$0xff]  ;;  %s1530_s14 = smov 96   ;;  %s1162_s8 = sshll.u32 %s1590_s28, 3 }
  0x51   : > { %413 = vrot.lane.b32.xlu0 %v1251_v2, %s1529_s25  ;;  %v1739_v4 = vld [vmem:[#allocation7] sm:$0xff]  ;;  %v1768_v10 = vld [vmem:[#allocation8 + $0x10] sm:$0xff]  ;;  %434 = vmatpush.msra.mxu1 %v1766_v9  ;;  %v1772_v12 = vld [vmem:[#allocation8 + $0x8] sm:$0xff]  ;;  %s996_s16 = scalar_lea.hbm %s1928_s6, %s1162_s8  ;;  %s356_s19 = scalar_lea.vmem [#allocation11], %s1700_s3 }
  0x52   : > { %384 = vmatpush.msra.mxu0 %v1728_v1  ;;  %465 = vmatpush.msra.mxu2 %v1728_v1  ;;  %v1746_v5 = vld [vmem:[%s1927_s5] sm:$0x1]  ;;  %v411_v29 = vld [vmem:[%s1712_s7] sm:$0x1]  ;;  %v448_v37 = vld [vmem:[%s1704_s18 + $0x1] sm:$0x1] }
  0x53   : > { %v366_v6 = vld [vmem:[%s1704_s18] sm:$0x1]  ;;  %514 = vmatpush.msra.mxu3 %v1766_v9  ;;  %435 = vmatpush.msra.mxu1 %v1768_v10  ;;  %v492_v56 = vld [vmem:[%s1712_s7 + $0x1] sm:$0x1]  ;;  %v528_v2 = vld [vmem:[%s1704_s18 + $0x2] sm:$0x1] }
  0x54   : > { %385 = vmatpush.msra.mxu0 %v1735_v3  ;;  %466 = vmatpush.msra.mxu2 %v1735_v3  ;;  %v1776_v13 = vld [vmem:[#allocation8] sm:$0xff]  ;;  %s998_s30 = sshll.u32 %s356_s19, 4  ;;  %s1000_s4 = sshll.u32 %s996_s16, 4  ;;  %s999_s30 = int_to_ptr.vmem [resolvable:$true] %s998_s30  ;;  %s1001_s4 = int_to_ptr.hbm [resolvable:$true] %s1000_s4 }
  0x55   : > { %515 = vmatpush.msra.mxu3 %v1768_v10  ;;  %436 = vmatpush.msra.mxu1 %v1772_v12  ;;  %s986_s13 = scalar_lea.sflag [#allocation4], %s1697_s2 }
  0x56   : > { %386 = vmatpush.msra.mxu0 %v1739_v4  ;;  %467 = vmatpush.msra.mxu2 %v1739_v4 }
  0x57   : > { %1139 = vmatmul.msk.f32.vlgmr.msra.gmra.mxu0 %vm367_vm0, %v1746_v5  ;;  %516 = vmatpush.msra.mxu3 %v1772_v12 }
  0x58   : > { %544 = vmatpush.msrb.mxu0 %v1726_v0  ;;  %624 = vmatpush.msrb.mxu2 %v1726_v0 }
  0x59   : > { %437 = vmatpush.msra.mxu1 %v1776_v13  ;;  %517 = vmatpush.msra.mxu3 %v1776_v13 }
  0x5a   : > { %545 = vmatpush.msrb.mxu0 %v1728_v1  ;;  %625 = vmatpush.msrb.mxu2 %v1728_v1 }
  0x5b   : > { %594 = vmatpush.msrb.mxu1 %v1766_v9  ;;  %674 = vmatpush.msrb.mxu3 %v1766_v9 }
  0x5c   : > { %546 = vmatpush.msrb.mxu0 %v1735_v3  ;;  %626 = vmatpush.msrb.mxu2 %v1735_v3 }
  0x5d   : > { %595 = vmatpush.msrb.mxu1 %v1768_v10  ;;  %675 = vmatpush.msrb.mxu3 %v1768_v10 }
  0x5e   : > { %547 = vmatpush.msrb.mxu0 %v1739_v4  ;;  %627 = vmatpush.msrb.mxu2 %v1739_v4 }
  0x5f   : > { %596 = vmatpush.msrb.mxu1 %v1772_v12  ;;  %676 = vmatpush.msrb.mxu3 %v1772_v12 }
  0x60   : > { %704 = vmatpush.msra.mxu0 %v1726_v0 }
  0x61   : > { %597 = vmatpush.msrb.mxu1 %v1776_v13  ;;  %677 = vmatpush.msrb.mxu3 %v1776_v13 }
  0x62   : > { %705 = vmatpush.msra.mxu0 %v1728_v1 }
  0x64   : > { %706 = vmatpush.msra.mxu0 %v1735_v3 }
  0x66   : > { %707 = vmatpush.msra.mxu0 %v1739_v4 }
  0xc3   : > { %v414_v23 = vpop.permute.xlu0 %413 }
  0xd4   : > { %v388_v7 = vpop.f32.mrf.mxu0 }
  0xd5   : > { %v391_v8 = vadd.f32 %v388_v7, %v366_v6 }
  0xd7   : > { %v1140_v11 = vmul.f32 -1.442695, %v391_v8 }
  0xd9   : > { %1252 = vpow2.f32 %v1140_v11 }
  0xdf   : > { %v1253_v14 = vpop.eup %1252 }
  0xe0   : > { %v395_v15 = vadd.f32 1.0, %v1253_v14 }
  0xe2   : > { %1254 = vrcp.f32 %v395_v15  ;;  %v407_v19 = vand.u32 2147483648, %v395_v15  ;;  %v405_v21 = vand.u32 2147483647, %v395_v15  ;;  %vm401_vm2 = vweird.f32 %v395_v15 }
  0xe4   : > { %v408_v24 = vor.u32 1.1754944e-38, %v407_v19  ;;  %vm406_vm4 = vcmp.eq.f32.partialorder %v405_v21, 8.507059e+37 }
  0xe8   : > { %v1255_v16 = vpop.eup %1254 }
  0xe9   : > { %v397_v17 = vmul.f32 %v1255_v16, %v395_v15  ;;  %vm402_vm1 = vweird.f32 %v1255_v16 }
  0xea   : > { %vm403_vm3 = vmor %vm401_vm2, %vm402_vm1 }
  0xeb   : > { %v398_v18 = vsub.f32 1.0, %v397_v17 }
  0xed   : > { %v399_v20 = vmul.f32 %v1255_v16, %v398_v18 }
  0xef   : > { %v400_v22 = vadd.f32 %v1255_v16, %v399_v20 }
  0xf1   : > { %v404_v25 = vsel %vm403_vm3, %v1255_v16, %v400_v22 }
  0xf2   : > { %v409_v26 = vsel %vm406_vm4, %v408_v24, %v404_v25  ;;  %v572_v24 = vld [vmem:[%s1712_s7 + $0x2] sm:$0x1] }
  0xf3   : > { %v416_v27 = vmul.f32 %v414_v23, %v409_v26  ;;  %v444_v32 = vsub.f32 1.0, %v409_v26 }
  0xf5   : > { %418 = vrot.lane.b32.xlu0 %v416_v27, %s1530_s14  ;;  %v445_v34 = vmul.f32 %v444_v32, %v1746_v5 }
 0x167   : > { %v419_v28 = vpop.permute.xlu0 %418 }
 0x168   : > { %1141 = vmatmul.msk.f32.vlgmr.msra.gmra.mxu1 %vm367_vm0, %v419_v28 }
 0x169   : > { %754 = vmatpush.msra.mxu1 %v1766_v9 }
 0x16b   : > { %755 = vmatpush.msra.mxu1 %v1768_v10 }
 0x16d   : > { %756 = vmatpush.msra.mxu1 %v1772_v12 }
 0x16f   : > { %757 = vmatpush.msra.mxu1 %v1776_v13 }
 0x1e5   : > { %v439_v30 = vpop.f32.mrf.mxu1 }
 0x1e6   : > { %v442_v31 = vadd.f32 %v439_v30, %v411_v29 }
 0x1e8   : > { %1256 = vtanh.f32 %v442_v31 }
 0x1ee   : > { %v1257_v33 = vpop.eup %1256 }
 0x1ef   : > { %v446_v35 = vmul.f32 %v1257_v33, %v409_v26 }
 0x1f1   : > { %v1798_v36 = vadd.f32 %v446_v35, %v445_v34 }
 0x1f3   : > { %493 = vrot.lane.b32.xlu1 %v1798_v36, %s1529_s25  ;;  %1142 = vmatmul.msk.f32.vlgmr.msra.gmra.mxu2 %vm367_vm0, %v1798_v36 }
 0x1f4   : > { %784 = vmatpush.msra.mxu2 %v1726_v0 }
 0x1f6   : > { %785 = vmatpush.msra.mxu2 %v1728_v1 }
 0x1f8   : > { %786 = vmatpush.msra.mxu2 %v1735_v3 }
 0x1fa   : > { %787 = vmatpush.msra.mxu2 %v1739_v4 }
 0x265   : > { %v494_v52 = vpop.permute.xlu1 %493 }
 0x276   : > { %v469_v38 = vpop.f32.mrf.mxu2 }
 0x277   : > { %v472_v39 = vadd.f32 %v469_v38, %v448_v37 }
 0x279   : > { %v1143_v40 = vmul.f32 -1.442695, %v472_v39 }
 0x27b   : > { %1258 = vpow2.f32 %v1143_v40 }
 0x281   : > { %v1259_v41 = vpop.eup %1258 }
 0x282   : > { %v476_v42 = vadd.f32 1.0, %v1259_v41 }
 0x284   : > { %1260 = vrcp.f32 %v476_v42  ;;  %v488_v46 = vand.u32 2147483648, %v476_v42  ;;  %v486_v48 = vand.u32 2147483647, %v476_v42  ;;  %vm482_vm6 = vweird.f32 %v476_v42 }
 0x286   : > { %v489_v50 = vor.u32 1.1754944e-38, %v488_v46  ;;  %vm487_vm8 = vcmp.eq.f32.partialorder %v486_v48, 8.507059e+37  ;;  %v652_v48 = vld [vmem:[%s1712_s7 + $0x3] sm:$0x1] }
 0x28a   : > { %v1261_v43 = vpop.eup %1260 }
 0x28b   : > { %v478_v44 = vmul.f32 %v1261_v43, %v476_v42  ;;  %vm483_vm5 = vweird.f32 %v1261_v43 }
 0x28c   : > { %vm484_vm7 = vmor %vm482_vm6, %vm483_vm5 }
 0x28d   : > { %v479_v45 = vsub.f32 1.0, %v478_v44 }
 0x28f   : > { %v480_v47 = vmul.f32 %v1261_v43, %v479_v45 }
 0x291   : > { %v481_v49 = vadd.f32 %v1261_v43, %v480_v47 }
 0x293   : > { %v485_v51 = vsel %vm484_vm7, %v1261_v43, %v481_v49 }
 0x294   : > { %v490_v53 = vsel %vm487_vm8, %v489_v50, %v485_v51 }
 0x295   : > { %v496_v54 = vmul.f32 %v494_v52, %v490_v53  ;;  %v524_v59 = vsub.f32 1.0, %v490_v53 }
 0x297   : > { %498 = vrot.lane.b32.xlu1 %v496_v54, %s1530_s14  ;;  %v525_v62 = vmul.f32 %v524_v59, %v1798_v36 }
 0x309   : > { %v499_v55 = vpop.permute.xlu1 %498 }
 0x30a   : > { %1144 = vmatmul.msk.f32.vlgmr.msra.gmra.mxu3 %vm367_vm0, %v499_v55 }
 0x30b   : > { %834 = vmatpush.msra.mxu3 %v1766_v9 }
 0x30d   : > { %835 = vmatpush.msra.mxu3 %v1768_v10 }
 0x30f   : > { %836 = vmatpush.msra.mxu3 %v1772_v12 }
 0x311   : > { %837 = vmatpush.msra.mxu3 %v1776_v13 }
 0x38d   : > { %v519_v57 = vpop.f32.mrf.mxu3 }
 0x38e   : > { %v522_v58 = vadd.f32 %v519_v57, %v492_v56  ;;  %v688_v56 = vld [vmem:[%s1704_s18 + $0x4] sm:$0x1] }
 0x390   : > { %1262 = vtanh.f32 %v522_v58 }
 0x396   : > { %v1263_v60 = vpop.eup %1262 }
 0x397   : > { %v526_v61 = vmul.f32 %v1263_v60, %v490_v53 }
 0x399   : > { %v1817_v63 = vadd.f32 %v526_v61, %v525_v62 }
 0x39b   : > { %573 = vrot.lane.b32.xlu2 %v1817_v63, %s1529_s25  ;;  %1145 = vmatmul.msk.f32.vlgmr.msrb.gmra.mxu0 %vm367_vm0, %v1817_v63 }
 0x39c   : > { %864 = vmatpush.msrb.mxu0 %v1726_v0 }
 0x39e   : > { %865 = vmatpush.msrb.mxu0 %v1728_v1 }
 0x3a0   : > { %866 = vmatpush.msrb.mxu0 %v1735_v3 }
 0x3a2   : > { %867 = vmatpush.msrb.mxu0 %v1739_v4 }
 0x3f5   : > { %v574_v20 = vpop.permute.xlu2 %573 }
 0x418   : > { %v549_v6 = vpop.f32.mrf.mxu0 }
 0x419   : > { %v552_v7 = vadd.f32 %v549_v6, %v528_v2 }
 0x41b   : > { %v1146_v8 = vmul.f32 -1.442695, %v552_v7 }
 0x41d   : > { %1264 = vpow2.f32 %v1146_v8 }
 0x423   : > { %v1265_v11 = vpop.eup %1264 }
 0x424   : > { %v556_v14 = vadd.f32 1.0, %v1265_v11 }
 0x426   : > { %1266 = vrcp.f32 %v556_v14  ;;  %v568_v18 = vand.u32 2147483648, %v556_v14  ;;  %v566_v0 = vand.u32 2147483647, %v556_v14  ;;  %vm562_vm10 = vweird.f32 %v556_v14 }
 0x428   : > { %v569_v3 = vor.u32 1.1754944e-38, %v568_v18  ;;  %vm567_vm12 = vcmp.eq.f32.partialorder %v566_v0, 8.507059e+37 }
 0x42c   : > { %v1267_v15 = vpop.eup %1266 }
 0x42d   : > { %v558_v16 = vmul.f32 %v1267_v15, %v556_v14  ;;  %vm563_vm9 = vweird.f32 %v1267_v15 }
 0x42e   : > { %vm564_vm11 = vmor %vm562_vm10, %vm563_vm9 }
 0x42f   : > { %v559_v17 = vsub.f32 1.0, %v558_v16 }
 0x431   : > { %v560_v19 = vmul.f32 %v1267_v15, %v559_v17 }
 0x433   : > { %v561_v1 = vadd.f32 %v1267_v15, %v560_v19 }
 0x435   : > { %v565_v4 = vsel %vm564_vm11, %v1267_v15, %v561_v1  ;;  %v732_v1 = vld [vmem:[%s1712_s7 + $0x4] sm:$0x1] }
 0x436   : > { %v570_v21 = vsel %vm567_vm12, %v569_v3, %v565_v4 }
 0x437   : > { %v576_v22 = vmul.f32 %v574_v20, %v570_v21  ;;  %v604_v27 = vsub.f32 1.0, %v570_v21 }
 0x439   : > { %578 = vrot.lane.b32.xlu2 %v576_v22, %s1530_s14  ;;  %v605_v30 = vmul.f32 %v604_v27, %v1817_v63 }
 0x493   : > { %v579_v23 = vpop.permute.xlu2 %578 }
 0x494   : > { %1147 = vmatmul.msk.f32.vlgmr.msrb.gmra.mxu1 %vm367_vm0, %v579_v23 }
 0x495   : > { %914 = vmatpush.msrb.mxu1 %v1766_v9  ;;  %v608_v9 = vld [vmem:[%s1704_s18 + $0x3] sm:$0x1] }
 0x497   : > { %915 = vmatpush.msrb.mxu1 %v1768_v10 }
 0x499   : > { %916 = vmatpush.msrb.mxu1 %v1772_v12 }
 0x49b   : > { %917 = vmatpush.msrb.mxu1 %v1776_v13 }
 0x511   : > { %v599_v25 = vpop.f32.mrf.mxu1 }
 0x512   : > { %v602_v26 = vadd.f32 %v599_v25, %v572_v24  ;;  %v768_v25 = vld [vmem:[%s1704_s18 + $0x5] sm:$0x1] }
 0x514   : > { %1268 = vtanh.f32 %v602_v26 }
 0x51a   : > { %v1269_v28 = vpop.eup %1268 }
 0x51b   : > { %v606_v29 = vmul.f32 %v1269_v28, %v570_v21 }
 0x51d   : > { %v1836_v31 = vadd.f32 %v606_v29, %v605_v30 }
 0x51f   : > { %653 = vrot.lane.b32.xlu0 %v1836_v31, %s1529_s25  ;;  %1148 = vmatmul.msk.f32.vlgmr.msrb.gmra.mxu2 %vm367_vm0, %v1836_v31 }
 0x591   : > { %v654_v44 = vpop.permute.xlu0 %653 }
 0x5a2   : > { %v629_v10 = vpop.f32.mrf.mxu2 }
 0x5a3   : > { %v632_v12 = vadd.f32 %v629_v10, %v608_v9 }
 0x5a5   : > { %v1149_v13 = vmul.f32 -1.442695, %v632_v12 }
 0x5a7   : > { %1270 = vpow2.f32 %v1149_v13 }
 0x5ad   : > { %v1271_v32 = vpop.eup %1270 }
 0x5ae   : > { %v636_v33 = vadd.f32 1.0, %v1271_v32 }
 0x5b0   : > { %1272 = vrcp.f32 %v636_v33  ;;  %v648_v38 = vand.u32 2147483648, %v636_v33  ;;  %v646_v40 = vand.u32 2147483647, %v636_v33  ;;  %vm642_vm14 = vweird.f32 %v636_v33 }
 0x5b2   : > { %v649_v42 = vor.u32 1.1754944e-38, %v648_v38  ;;  %vm647_vm1 = vcmp.eq.f32.partialorder %v646_v40, 8.507059e+37 }
 0x5b6   : > { %v1273_v34 = vpop.eup %1272 }
 0x5b7   : > { %v638_v35 = vmul.f32 %v1273_v34, %v636_v33  ;;  %vm643_vm13 = vweird.f32 %v1273_v34 }
 0x5b8   : > { %vm644_vm15 = vmor %vm642_vm14, %vm643_vm13  ;;  %vm943_vm14 = vcmask 1040384  }
 0x5b9   : > { %v639_v37 = vsub.f32 1.0, %v638_v35 }
 0x5bb   : > { %v640_v39 = vmul.f32 %v1273_v34, %v639_v37 }
 0x5bd   : > { %v641_v41 = vadd.f32 %v1273_v34, %v640_v39 }
 0x5bf   : > { %v645_v43 = vsel %vm644_vm15, %v1273_v34, %v641_v41  ;;  %vm945_vm15 = vcmask 1041408  }
 0x5c0   : > { %v650_v45 = vsel %vm647_vm1, %v649_v42, %v645_v43  ;;  %v812_v42 = vld [vmem:[%s1712_s7 + $0x5] sm:$0x1]  ;;  %vm947_vm1 = vcmask 1042432  }
 0x5c1   : > { %v656_v46 = vmul.f32 %v654_v44, %v650_v45  ;;  %v684_v51 = vsub.f32 1.0, %v650_v45 }
 0x5c3   : > { %658 = vrot.lane.b32.xlu1 %v656_v46, %s1530_s14  ;;  %v685_v54 = vmul.f32 %v684_v51, %v1836_v31 }
 0x635   : > { %v659_v47 = vpop.permute.xlu1 %658 }
 0x636   : > { %1150 = vmatmul.msk.f32.vlgmr.msrb.gmra.mxu3 %vm367_vm0, %v659_v47 }
 0x6b9   : > { %v679_v49 = vpop.f32.mrf.mxu3 }
 0x6ba   : > { %v682_v50 = vadd.f32 %v679_v49, %v652_v48 }
 0x6bc   : > { %1274 = vtanh.f32 %v682_v50  ;;  %v848_v50 = vld [vmem:[%s1704_s18 + $0x6] sm:$0x1]  ;;  %s1458_s18 = sshra.s32 %s1001_s4, 4  ;;  %s1459_s18 = int_to_ptr.hbm [resolvable:$true] %s1458_s18 }
 0x6bd   : > { %s1460_s23 = scalar_lea.hbm %s1459_s18, 8  ;;  %p1465_p7 = scmp.lt.s32.totalorder %s1459_s18, %s1928_s6 }
 0x6be   : > { %p1461_p1 = scmp.ne.s32.totalorder %s1459_s18, %s1460_s23 }
 0x6c0   : > { %p1462_p3 = pnand %p1461_p1, %p1646_p0 }
 0x6c2   : > { %v1275_v52 = vpop.eup %1274  ;;  %p1463_p13 = pneg %p1462_p3 }
 0x6c3   : > { %v686_v53 = vmul.f32 %v1275_v52, %v650_v45 }
 0x6c5   : > { %v1847_v55 = vadd.f32 %v686_v53, %v685_v54 }
 0x6c7   : > { %733 = vrot.lane.b32.xlu2 %v1847_v55, %s1529_s25  ;;  %1151 = vmatmul.msk.f32.vlgmr.msra.gmra.mxu0 %vm367_vm0, %v1847_v55 }
 0x721   : > { %v734_v17 = vpop.permute.xlu2 %733 }
 0x744   : > { %v709_v57 = vpop.f32.mrf.mxu0 }
 0x745   : > { %v712_v58 = vadd.f32 %v709_v57, %v688_v56 }
 0x747   : > { %v1152_v59 = vmul.f32 -1.442695, %v712_v58 }
 0x749   : > { %1276 = vpow2.f32 %v1152_v59 }
 0x74f   : > { %v1277_v60 = vpop.eup %1276 }
 0x750   : > { %v716_v61 = vadd.f32 1.0, %v1277_v60 }
 0x752   : > { %1278 = vrcp.f32 %v716_v61  ;;  %v728_v7 = vand.u32 2147483648, %v716_v61  ;;  %v726_v11 = vand.u32 2147483647, %v716_v61  ;;  %vm722_vm3 = vweird.f32 %v716_v61 }
 0x754   : > { %v729_v15 = vor.u32 1.1754944e-38, %v728_v7  ;;  %vm727_vm5 = vcmp.eq.f32.partialorder %v726_v11, 8.507059e+37 }
 0x758   : > { %v1279_v62 = vpop.eup %1278 }
 0x759   : > { %v718_v2 = vmul.f32 %v1279_v62, %v716_v61  ;;  %vm723_vm2 = vweird.f32 %v1279_v62 }
 0x75a   : > { %vm724_vm4 = vmor %vm722_vm3, %vm723_vm2  ;;  %vm949_vm2 = vcmask 1043456   ;;  %vm951_vm3 = vcmask 1044480  }
 0x75b   : > { %v719_v6 = vsub.f32 1.0, %v718_v2 }
 0x75d   : > { %v720_v8 = vmul.f32 %v1279_v62, %v719_v6 }
 0x75f   : > { %v721_v14 = vadd.f32 %v1279_v62, %v720_v8 }
 0x761   : > { %v725_v16 = vsel %vm724_vm4, %v1279_v62, %v721_v14  ;;  %vm953_vm4 = vcmask 1045504  }
 0x762   : > { %v730_v18 = vsel %vm727_vm5, %v729_v15, %v725_v16  ;;  %v960_v16 = vld [vmem:[#allocation10 + $0x18] sm:$0xff]  ;;  %vm955_vm5 = vcmask 1046528  }
 0x763   : > { %v736_v19 = vmul.f32 %v734_v17, %v730_v18  ;;  %v764_v20 = vsub.f32 1.0, %v730_v18  ;;  %976 = vmatpush.msrb.mxu2 %v960_v16  ;;  %v959_v17 = vld [vmem:[#allocation10 + $0x10] sm:$0xff] }
 0x765   : > { %738 = vrot.lane.b32.xlu0 %v736_v19, %s1530_s14  ;;  %v765_v23 = vmul.f32 %v764_v20, %v1847_v55  ;;  %977 = vmatpush.msrb.mxu2 %v959_v17  ;;  %v957_v19 = vld [vmem:[#allocation10] sm:$0xff] }
 0x7d7   : > { %v739_v0 = vpop.permute.xlu0 %738 }
 0x7d8   : > { %1153 = vmatmul.msk.f32.vlgmr.msra.gmra.mxu1 %vm367_vm0, %v739_v0  ;;  %v892_v0 = vld [vmem:[%s1712_s7 + $0x6] sm:$0x1]  ;;  %s1464_s7 = scalar_lea.hbm %s1928_s6, 16 }
 0x7d9   : > { %p1466_p9 = scmp.lt.s32.totalorder %s1464_s7, %s1460_s23 }
 0x7db   : > { %p1467_p8 = por %p1466_p9, %p1465_p7 }
 0x7dd   : > { %p1468_p10 = pnand %p1467_p8, %p1463_p13 }
 0x855   : > { %v759_v3 = vpop.f32.mrf.mxu1 }
 0x856   : > { %v762_v4 = vadd.f32 %v759_v3, %v732_v1 }
 0x858   : > { %1280 = vtanh.f32 %v762_v4  ;;  %v928_v4 = vrot.slane %v1798_v36, 7 }
 0x85e   : > { %v1281_v21 = vpop.eup %1280 }
 0x85f   : > { %v766_v22 = vmul.f32 %v1281_v21, %v730_v18  ;;  %v958_v18 = vld [vmem:[#allocation10 + $0x8] sm:$0xff]  ;;  %v930_v21 = vrot.slane %v1817_v63, 6 }
 0x860   : > { %978 = vmatpush.msrb.mxu2 %v958_v18 }
 0x861   : > { %v1858_v24 = vadd.f32 %v766_v22, %v765_v23  ;;  %v932_v22 = vrot.slane %v1836_v31, 5 }
 0x862   : > { %979 = vmatpush.msrb.mxu2 %v957_v19 }
 0x863   : > { %813 = vrot.lane.b32.xlu1 %v1858_v24, %s1529_s25  ;;  %1154 = vmatmul.msk.f32.vlgmr.msra.gmra.mxu2 %vm367_vm0, %v1858_v24 }
 0x8d5   : > { %v814_v38 = vpop.permute.xlu1 %813 }
 0x8e6   : > { %v789_v26 = vpop.f32.mrf.mxu2 }
 0x8e7   : > { %v792_v27 = vadd.f32 %v789_v26, %v768_v25  ;;  %v934_v25 = vrot.slane %v1847_v55, 4  ;;  %v944_v26 = vsel %vm943_vm14, %v1746_v5, %v928_v4 }
 0x8e8   : > { %v946_v63 = vsel %vm945_vm15, %v944_v26, %v930_v21 }
 0x8e9   : > { %v1155_v28 = vmul.f32 -1.442695, %v792_v27 }
 0x8eb   : > { %1282 = vpow2.f32 %v1155_v28 }
 0x8f1   : > { %v1283_v29 = vpop.eup %1282 }
 0x8f2   : > { %v796_v30 = vadd.f32 1.0, %v1283_v29  ;;  %v936_v29 = vrot.slane %v1858_v24, 3 }
 0x8f4   : > { %1284 = vrcp.f32 %v796_v30  ;;  %v808_v13 = vand.u32 2147483648, %v796_v30  ;;  %v806_v33 = vand.u32 2147483647, %v796_v30  ;;  %vm802_vm7 = vweird.f32 %v796_v30 }
 0x8f6   : > { %v809_v35 = vor.u32 1.1754944e-38, %v808_v13  ;;  %vm807_vm9 = vcmp.eq.f32.partialorder %v806_v33, 8.507059e+37 }
 0x8fa   : > { %v1285_v9 = vpop.eup %1284 }
 0x8fb   : > { %v798_v10 = vmul.f32 %v1285_v9, %v796_v30  ;;  %vm803_vm6 = vweird.f32 %v1285_v9  ;;  %v948_v30 = vsel %vm947_vm1, %v946_v63, %v932_v22 }
 0x8fc   : > { %vm804_vm8 = vmor %vm802_vm7, %vm803_vm6 }
 0x8fd   : > { %v799_v12 = vsub.f32 1.0, %v798_v10 }
 0x8ff   : > { %v800_v32 = vmul.f32 %v1285_v9, %v799_v12 }
 0x901   : > { %v801_v34 = vadd.f32 %v1285_v9, %v800_v32 }
 0x903   : > { %v805_v37 = vsel %vm804_vm8, %v1285_v9, %v801_v34  ;;  %v950_v9 = vsel %vm949_vm2, %v948_v30, %v934_v25 }
 0x904   : > { %v810_v39 = vsel %vm807_vm9, %v809_v35, %v805_v37  ;;  %v952_v55 = vsel %vm951_vm3, %v950_v9, %v936_v29 }
 0x905   : > { %v816_v40 = vmul.f32 %v814_v38, %v810_v39  ;;  %v844_v45 = vsub.f32 1.0, %v810_v39 }
 0x907   : > { %818 = vrot.lane.b32.xlu2 %v816_v40, %s1530_s14  ;;  %v845_v48 = vmul.f32 %v844_v45, %v1858_v24 }
 0x961   : > { %v819_v41 = vpop.permute.xlu2 %818 }
 0x962   : > { %1156 = vmatmul.msk.f32.vlgmr.msra.gmra.mxu3 %vm367_vm0, %v819_v41 }
 0x9e5   : > { %v839_v43 = vpop.f32.mrf.mxu3 }
 0x9e6   : > { %v842_v44 = vadd.f32 %v839_v43, %v812_v42 }
 0x9e8   : > { %1286 = vtanh.f32 %v842_v44 }
 0x9ee   : > { %v1287_v46 = vpop.eup %1286 }
 0x9ef   : > { %v846_v47 = vmul.f32 %v1287_v46, %v810_v39 }
 0x9f1   : > { %v1869_v49 = vadd.f32 %v846_v47, %v845_v48 }
 0x9f3   : > { %893 = vrot.lane.b32.xlu0 %v1869_v49, %s1529_s25  ;;  %1157 = vmatmul.msk.f32.vlgmr.msrb.gmra.mxu0 %vm367_vm0, %v1869_v49  ;;  %v938_v36 = vrot.slane %v1869_v49, 2 }
 0x9f5   : > { %v954_v10 = vsel %vm953_vm4, %v952_v55, %v938_v36 }
 0xa65   : > { %v894_v8 = vpop.permute.xlu0 %893 }
 0xa70   : > { %v869_v51 = vpop.f32.mrf.mxu0 }
 0xa71   : > { %v872_v52 = vadd.f32 %v869_v51, %v848_v50 }
 0xa73   : > { %v1158_v53 = vmul.f32 -1.442695, %v872_v52 }
 0xa75   : > { %1288 = vpow2.f32 %v1158_v53 }
 0xa7b   : > { %v1289_v54 = vpop.eup %1288 }
 0xa7c   : > { %v876_v56 = vadd.f32 1.0, %v1289_v54 }
 0xa7e   : > { %1290 = vrcp.f32 %v876_v56  ;;  %v888_v60 = vand.u32 2147483648, %v876_v56  ;;  %v886_v62 = vand.u32 2147483647, %v876_v56  ;;  %vm882_vm11 = vweird.f32 %v876_v56 }
 0xa80   : > { %v889_v6 = vor.u32 1.1754944e-38, %v888_v60  ;;  %vm887_vm13 = vcmp.eq.f32.partialorder %v886_v62, 8.507059e+37 }
 0xa84   : > { %v1291_v57 = vpop.eup %1290 }
 0xa85   : > { %v878_v58 = vmul.f32 %v1291_v57, %v876_v56  ;;  %vm883_vm10 = vweird.f32 %v1291_v57 }
 0xa86   : > { %vm884_vm12 = vmor %vm882_vm11, %vm883_vm10 }
 0xa87   : > { %v879_v59 = vsub.f32 1.0, %v878_v58 }
 0xa89   : > { %v880_v61 = vmul.f32 %v1291_v57, %v879_v59 }
 0xa8b   : > { %v881_v2 = vadd.f32 %v1291_v57, %v880_v61 }
 0xa8d   : > { %v885_v7 = vsel %vm884_vm12, %v1291_v57, %v881_v2 }
 0xa8e   : > { %v890_v11 = vsel %vm887_vm13, %v889_v6, %v885_v7 }
 0xa8f   : > { %v896_v14 = vmul.f32 %v894_v8, %v890_v11  ;;  %v924_v20 = vsub.f32 1.0, %v890_v11 }
 0xa91   : > { %898 = vrot.lane.b32.xlu1 %v896_v14, %s1530_s14  ;;  %v925_v27 = vmul.f32 %v924_v20, %v1869_v49 }
 0xb03   : > { %v899_v15 = vpop.permute.xlu1 %898 }
 0xb04   : > { %1159 = vmatmul.msk.f32.vlgmr.msrb.gmra.mxu1 %vm367_vm0, %v899_v15 }
 0xb81   : > { %v919_v1 = vpop.f32.mrf.mxu1 }
 0xb82   : > { %v922_v3 = vadd.f32 %v919_v1, %v892_v0 }
 0xb84   : > { %1292 = vtanh.f32 %v922_v3 }
 0xb8a   : > { %v1293_v23 = vpop.eup %1292 }
 0xb8b   : > { %v926_v28 = vmul.f32 %v1293_v23, %v890_v11 }
 0xb8d   : > { %v927_v31 = vadd.f32 %v926_v28, %v925_v27 }
 0xb8f   : > { %v941_v5 = vrot.slane %v927_v31, 1 }
 0xb91   : > { %v956_v12 = vsel %vm955_vm5, %v954_v10, %v941_v5 }
 0xb92   : > { %1160 = vmatmul.msk.f32.vlgmr.msrb.gmra.mxu2 %vm367_vm0, %v956_v12 }
 0xc15   : > { %v981_v24 = vpop.f32.mrf.mxu2 }
 0xc16   : > { %984 = vst [vmem:[%s356_s19] sm:$0xff] %v981_v24 }
 0xc17   : > { %1471 = shalt.err (!%p1468_p10)
}
 0xc18   : > { %1181 = dma.vmem_to_hbm [thread:$0]  (%p1646_p0), %s999_s30, 128, %s1001_s4, %s986_s13  }
 0xc19 PF: > { %s1012_s2 = sand.u32 1, %s1510_s21   ;;  %p1945_p12 = scmp.ge.s32.totalorder %s1522_s24, 2 }
 0xc1a   : > { %s1013_s20 = scalar_lea.sflag [#allocation4], %s1012_s2 }
 0xc1b   : > { %p1201_p5 = pnand %p1945_p12, %p1652_p6 }
 0xc1d   : > { %p1202_p11 = pneg %p1201_p5 }
 0xc1f   : > { %1505 = dma.done.wait (%p1202_p11), %s1013_s20, 128  }
 0xc20   : > { %1507 = vsyncadd (%p1202_p11), %s1013_s20, 4294967168  ;;  %s1946_s25 = sld [smem:[#allocation17_spill]]  ;;  %p23_p2 = scmp.ge.s32.totalorder %s1622_s26, 4  }
 0xc21   : > { %s1947_s23 = sld [smem:[#allocation18_spill]]  ;;  %s1948_s21 = smov %s1514_s22 }
 0xc22   : > { %s1950_s24 = smov %s1622_s26  ;;  %25 = sbr.rel (!%p23_p2) target bundleno = 12 (0xc), region = 114 }
 0xc26   : > { %s1949_s22 = smov %s1946_s25 }
 0xc27   :  { %1019 = vsyncpa [#allocation3], 1 }
 0xc28   :  { %1021 = vsyncpa [#allocation3 + $0x1], 1 }
 0xc29   :  { %1022 = vsyncpa [#allocation6], 1 }
 0xc2a   :  { %1024 = vsyncpa [#allocation6 + $0x1], 1 }
 0xc2b   :  { %1025 = vsyncpa [#allocation9], 1 }
 0xc2c   :  { %1026 = vsyncpa [#allocation4], 1 }
 0xc2d   :  { %1028 = vsyncpa [#allocation4 + $0x1], 1 }

</bundles_post_ra>
